<compile_context>
chip_gen: v7x
topology: tpu7x:2x2x1
jax: 0.10.0
libtpu: 0.0.40
codegen_flags: <defaults>
</compile_context>

<pallas_src>
import functools

import jax
import jax.numpy as jnp
from jax import lax
from jax.experimental import pallas as pl
from jax.experimental.pallas import tpu as pltpu

LANE = 128        # lane width; per-layer output dims are zero-padded to this
SUB = 16          # bf16 sublane packing -> every packed block starts 16-row aligned
OUT_LANES = 8     # narrow output slab: cols 0,1 = action probs, col 2 = value


def _round_up(x, m):
    return (x + m - 1) // m * m


def _cdiv(a, b):
    return -(-a // b)


def _pad2d(w, rows, cols):
    w = jnp.asarray(w, jnp.float32)
    out = jnp.zeros((rows, cols), jnp.float32)
    return out.at[: w.shape[0], : w.shape[1]].set(w)


def pack_params(p, embedding_dim, hidden_dim, dtype=jnp.bfloat16):
    """Pack all weights/biases into ONE lane-padded (R, 128) buffer (single DMA)."""
    E, H = embedding_dim, hidden_dim
    H2, H4 = H // 2, H // 4
    assert H <= LANE and H2 <= LANE and 2 * H4 <= LANE, "hidden sizes must fit one lane tile"

    # Layer 1 split along (query | result | uncertainty) rows -> host concat fused away.
    wq = p["w1"][:E]                                   # (E, H)
    wr = p["w1"][E:2 * E]                              # (E, H)
    wu = jnp.reshape(p["w1"][2 * E], (1, -1))          # (1, H)
    b1 = jnp.reshape(p["b1"], (1, -1))
    b2 = jnp.reshape(p["b2"], (1, -1))

    # Fused policy/value hidden layer: enc @ [wp1 | wv1].
    wh1 = jnp.concatenate([p["wp1"], p["wv1"]], axis=1)                  # (H2, 2*H4)
    bh1 = jnp.concatenate([jnp.reshape(p["bp1"], (1, -1)),
                           jnp.reshape(p["bv1"], (1, -1))], axis=1)      # (1, 2*H4)
    # Fused final layer: block-diag [[wp2, 0], [0, wv2]] -> cols 0,1 logits, col 2 value.
    wh2 = jnp.zeros((2 * H4, 3), jnp.float32)
    wh2 = wh2.at[:H4, 0:2].set(p["wp2"])
    wh2 = wh2.at[H4:, 2:3].set(p["wv2"])
    bh2 = jnp.concatenate([jnp.reshape(p["bp2"], (1, -1)),
                           jnp.reshape(p["bv2"], (1, -1))], axis=1)      # (1, 3)

    vec = jnp.concatenate(
        [_pad2d(v, 1, LANE) for v in (wu, b1, b2, bh1, bh2)], axis=0)    # (5, 128)

    blocks, offsets = [], {}

    def add(name, w):
        offsets[name] = sum(b.shape[0] for b in blocks)
        blocks.append(_pad2d(w, _round_up(w.shape[0], SUB), LANE))

    add("off_wq", wq)
    add("off_wr", wr)
    add("off_vec", vec)
    add("off_w2", _pad2d(p["w2"], LANE, LANE))
    add("off_wh1", _pad2d(wh1, LANE, LANE))
    add("off_wh2", _pad2d(wh2, LANE, LANE))

    packed = jnp.concatenate(blocks, axis=0).astype(dtype)
    return packed, offsets


def _mc_kernel(q_ref, r_ref, u_ref, p_ref, out_ref, *,
               e_dim, off_wq, off_wr, off_vec, off_w2, off_wh1, off_wh2):
    f32, bf16 = jnp.float32, jnp.bfloat16

    q = q_ref[...]                                      # (bt, E)  bf16
    r = r_ref[...]                                      # (bt, E)  bf16
    u = u_ref[...]                                      # (bt, 1)  f32

    wq = p_ref[off_wq:off_wq + e_dim, :]                # (E, 128) bf16
    wr = p_ref[off_wr:off_wr + e_dim, :]                # (E, 128) bf16
    vec = p_ref[off_vec:off_vec + 8, :].astype(f32)     # wu, b1, b2, bh1, bh2 (+ zero rows)
    wu, b1, b2 = vec[0:1, :], vec[1:2, :], vec[2:3, :]
    bh1, bh2 = vec[3:4, :], vec[4:5, :]

    # state_encoder[0]: concat([q, r, u]) @ W1 + b1  ==  q@Wq + r@Wr + u*Wu + b1
    h1 = (jnp.dot(q, wq, preferred_element_type=f32)
          + jnp.dot(r, wr, preferred_element_type=f32)
          + u * wu + b1)
    h1 = jnp.maximum(h1, 0.0)                           # (bt, 128); cols >= H stay exactly 0

    # state_encoder[2]
    w2 = p_ref[off_w2:off_w2 + LANE, :]
    enc = jnp.maximum(
        jnp.dot(h1.astype(bf16), w2, preferred_element_type=f32) + b2, 0.0)

    # fused policy/value hidden layer
    wh1 = p_ref[off_wh1:off_wh1 + LANE, :]
    hh = jnp.maximum(
        jnp.dot(enc.astype(bf16), wh1, preferred_element_type=f32) + bh1, 0.0)

    # fused final layer: cols 0,1 = policy logits, col 2 = value
    wh2 = p_ref[off_wh2:off_wh2 + LANE, :]
    head = jnp.dot(hh.astype(bf16), wh2, preferred_element_type=f32) + bh2

    l0, l1, val = head[:, 0:1], head[:, 1:2], head[:, 2:3]
    # 2-class softmax in closed form (no cross-lane max/sum reductions).
    p0 = pl.reciprocal(1.0 + jnp.exp(l1 - l0), approx=True)
    p1 = 1.0 - p0

    col = lax.broadcasted_iota(jnp.int32, out_ref.shape, 1)   # (bt, 8)
    out_ref[...] = jnp.where(col == 0, p0,
                   jnp.where(col == 1, p1,
                   jnp.where(col == 2, val, 0.0)))


def _choose_batch_tile(B, batch_tile):
    """Pick (bt, b_pad): bt multiple of 8 (128 when >1 tile); b_pad = n_tiles * bt >= B."""
    b8 = _round_up(max(B, 1), 8)
    batch_tile = max(_round_up(batch_tile, 8), 8)
    if b8 <= batch_tile and b8 < 1024:
        return b8, b8                                   # single full-extent tile
    n_tiles = max(2, _cdiv(b8, batch_tile))             # >=2 steps -> v7x 2-TC sharding
    bt = _round_up(_cdiv(b8, n_tiles), 128)             # balanced, 128-aligned tiles
    return bt, n_tiles * bt


def meta_controller_forward(query_emb, result_emb, uncertainty, packed, offsets,
                            embedding_dim, *, batch_tile=2048):
    B, E = query_emb.shape
    assert E == embedding_dim
    q = query_emb.astype(jnp.bfloat16)
    r = result_emb.astype(jnp.bfloat16)
    u = uncertainty.astype(jnp.float32).reshape(B, 1)

    bt, b_pad = _choose_batch_tile(B, batch_tile)
    if b_pad != B:
        pad = ((0, b_pad - B), (0, 0))
        q, r, u = jnp.pad(q, pad), jnp.pad(r, pad), jnp.pad(u, pad)

    R = packed.shape[0]
    kernel = functools.partial(_mc_kernel, e_dim=E, **offsets)

    out = pl.pallas_call(
        kernel,
        out_shape=jax.ShapeDtypeStruct((b_pad, OUT_LANES), jnp.float32),
        grid_spec=pltpu.PrefetchScalarGridSpec(
            num_scalar_prefetch=0,
            grid=(b_pad // bt,),
            in_specs=[
                pl.BlockSpec((bt, E), lambda i: (i, 0)),
                pl.BlockSpec((bt, E), lambda i: (i, 0)),
                pl.BlockSpec((bt, 1), lambda i: (i, 0)),
                pl.BlockSpec((R, LANE), lambda i: (0, 0)),   # packed weights, resident
            ],
            out_specs=pl.BlockSpec((bt, OUT_LANES), lambda i: (i, 0)),
        ),
        compiler_params=pltpu.CompilerParams(
            dimension_semantics=("parallel",)),
    )(q, r, u, packed)

    return out[:B, 0:2], out[:B, 2:3]                    # (action_probs, value)


def init_params(key, embedding_dim, hidden_dim):
    """Deterministic init mimicking nn.Linear (uniform +/- 1/sqrt(fan_in)); W as [in, out]."""
    d_in = embedding_dim * 2 + 1
    h, h2, h4 = hidden_dim, hidden_dim // 2, hidden_dim // 4

    def linear(key, fan_in, fan_out):
        kw, kb = jax.random.split(key)
        bound = 1.0 / jnp.sqrt(fan_in)
        w = jax.random.uniform(kw, (fan_in, fan_out), jnp.float32, -bound, bound)
        b = jax.random.uniform(kb, (1, fan_out), jnp.float32, -bound, bound)
        return w, b

    keys = jax.random.split(key, 6)
    w1, b1 = linear(keys[0], d_in, h)
    w2, b2 = linear(keys[1], h, h2)
    wp1, bp1 = linear(keys[2], h2, h4)
    wp2, bp2 = linear(keys[3], h4, 2)
    wv1, bv1 = linear(keys[4], h2, h4)
    wv2, bv2 = linear(keys[5], h4, 1)
    return dict(w1=w1, b1=b1, w2=w2, b2=b2,
                wp1=wp1, bp1=bp1, wp2=wp2, bp2=bp2,
                wv1=wv1, bv1=bv1, wv2=wv2, bv2=bv2)


def reference_forward(query_emb, result_emb, uncertainty, p):
    state = jnp.concatenate(
        [query_emb, result_emb, uncertainty[..., None]], axis=-1
    ).astype(jnp.float32)
    h1 = jax.nn.relu(state @ p["w1"] + p["b1"])
    enc = jax.nn.relu(h1 @ p["w2"] + p["b2"])
    p1 = jax.nn.relu(enc @ p["wp1"] + p["bp1"])
    probs = jax.nn.softmax(p1 @ p["wp2"] + p["bp2"], axis=-1)
    v1 = jax.nn.relu(enc @ p["wv1"] + p["bv1"])
    value = v1 @ p["wv2"] + p["bv2"]
    return probs, value


if __name__ == "__main__":
    embedding_dim = 32
    hidden_dim = 32
    batch = 2

    key = jax.random.PRNGKey(0)
    k_params, k_q, k_r, k_u = jax.random.split(key, 4)

    params = init_params(k_params, embedding_dim, hidden_dim)
    packed, offsets = pack_params(params, embedding_dim, hidden_dim)

    query_emb = jax.random.normal(k_q, (batch, embedding_dim), jnp.float32)
    result_emb = jax.random.normal(k_r, (batch, embedding_dim), jnp.float32)
    uncertainty = jax.random.uniform(k_u, (batch,), jnp.float32)

    probs, value = meta_controller_forward(query_emb, result_emb, uncertainty,
                                           packed, offsets, embedding_dim)
    jax.block_until_ready((probs, value))

    ref_probs, ref_value = reference_forward(query_emb, result_emb, uncertainty, params)
    assert probs.shape == (batch, 2) and value.shape == (batch, 1)
    # bf16 streaming weights/activations vs. f32 reference -> looser tolerance.
    assert jnp.allclose(probs, ref_probs, atol=3e-2, rtol=3e-2)
    assert jnp.allclose(value, ref_value, atol=3e-2, rtol=3e-2)
    assert jnp.allclose(jnp.sum(probs, axis=-1), 1.0, atol=1e-5)

    print("KERNEL_OK")
</pallas_src>

<mosaic_0001>
module attributes {stable_mosaic.version = 11 : i64} {
  func.func @_mc_kernel(%arg0: i32, %arg1: memref<8x32xbf16, #tpu.memory_space<vmem>>, %arg2: memref<8x32xbf16, #tpu.memory_space<vmem>>, %arg3: memref<8x1xf32, #tpu.memory_space<vmem>>, %arg4: memref<464x128xbf16, #tpu.memory_space<vmem>>, %arg5: memref<8x8xf32, #tpu.memory_space<vmem>>) attributes {dimension_semantics = [#tpu.dimension_semantics<parallel>], iteration_bounds = array<i64: 1>, scalar_prefetch = 0 : i64, scratch_operands = 0 : i64, tpu.core_type = #tpu.core_type<tc>, window_params = [{transform_indices = @transform_0, window_bounds = array<i64: 8, 32>}, {transform_indices = @transform_1, window_bounds = array<i64: 8, 32>}, {transform_indices = @transform_2, window_bounds = array<i64: 8, 1>}, {pipeline_mode = #tpu.pipeline_mode<synchronous>, transform_indices = @transform_3, window_bounds = array<i64: 464, 128>}, {transform_indices = @transform_4, window_bounds = array<i64: 8, 8>}]} {
    %c0 = arith.constant 0 : index
    %c0_0 = arith.constant 0 : index
    %0 = vector.load %arg1[%c0, %c0_0] : memref<8x32xbf16, #tpu.memory_space<vmem>>, vector<8x32xbf16>
    %c0_1 = arith.constant 0 : index
    %c0_2 = arith.constant 0 : index
    %1 = vector.load %arg2[%c0_1, %c0_2] : memref<8x32xbf16, #tpu.memory_space<vmem>>, vector<8x32xbf16>
    %c0_3 = arith.constant 0 : index
    %c0_4 = arith.constant 0 : index
    %2 = vector.load %arg3[%c0_3, %c0_4] : memref<8x1xf32, #tpu.memory_space<vmem>>, vector<8x1xf32>
    %c0_5 = arith.constant 0 : index
    %c0_6 = arith.constant 0 : index
    %3 = vector.load %arg4[%c0_5, %c0_6] : memref<464x128xbf16, #tpu.memory_space<vmem>>, vector<32x128xbf16>
    %c32 = arith.constant 32 : index
    %c0_7 = arith.constant 0 : index
    %4 = vector.load %arg4[%c32, %c0_7] : memref<464x128xbf16, #tpu.memory_space<vmem>>, vector<32x128xbf16>
    %c64 = arith.constant 64 : index
    %c0_8 = arith.constant 0 : index
    %5 = vector.load %arg4[%c64, %c0_8] : memref<464x128xbf16, #tpu.memory_space<vmem>>, vector<8x128xbf16>
    %6 = arith.extf %5 : vector<8x128xbf16> to vector<8x128xf32>
    %7 = vector.extract_strided_slice %6 {offsets = [0, 0], sizes = [1, 128], strides = [1, 1]} : vector<8x128xf32> to vector<1x128xf32>
    %8 = vector.extract_strided_slice %6 {offsets = [1, 0], sizes = [1, 128], strides = [1, 1]} : vector<8x128xf32> to vector<1x128xf32>
    %9 = vector.extract_strided_slice %6 {offsets = [2, 0], sizes = [1, 128], strides = [1, 1]} : vector<8x128xf32> to vector<1x128xf32>
    %10 = vector.extract_strided_slice %6 {offsets = [3, 0], sizes = [1, 128], strides = [1, 1]} : vector<8x128xf32> to vector<1x128xf32>
    %11 = vector.extract_strided_slice %6 {offsets = [4, 0], sizes = [1, 128], strides = [1, 1]} : vector<8x128xf32> to vector<1x128xf32>
    %cst = arith.constant dense<0.000000e+00> : vector<8x128xf32>
    %12 = tpu.matmul %0, %3, %cst {dimension_numbers = #tpu.dot_dimension_numbers<[1], [0], [0], [1], [0, 0, 1, 1], [], []>} : vector<8x32xbf16>, vector<32x128xbf16>, vector<8x128xf32> -> vector<8x128xf32>
    %cst_9 = arith.constant dense<0.000000e+00> : vector<8x128xf32>
    %13 = tpu.matmul %1, %4, %cst_9 {dimension_numbers = #tpu.dot_dimension_numbers<[1], [0], [0], [1], [0, 0, 1, 1], [], []>} : vector<8x32xbf16>, vector<32x128xbf16>, vector<8x128xf32> -> vector<8x128xf32>
    %14 = arith.addf %12, %13 : vector<8x128xf32>
    %15 = vector.broadcast %2 : vector<8x1xf32> to vector<8x128xf32>
    %16 = vector.broadcast %7 : vector<1x128xf32> to vector<8x128xf32>
    %17 = arith.mulf %15, %16 : vector<8x128xf32>
    %18 = arith.addf %14, %17 : vector<8x128xf32>
    %19 = vector.broadcast %8 : vector<1x128xf32> to vector<8x128xf32>
    %20 = arith.addf %18, %19 : vector<8x128xf32>
    %cst_10 = arith.constant 0.000000e+00 : f32
    %21 = vector.broadcast %cst_10 : f32 to vector<8x128xf32>
    %22 = arith.maximumf %20, %21 : vector<8x128xf32>
    %c80 = arith.constant 80 : index
    %c0_11 = arith.constant 0 : index
    %23 = vector.load %arg4[%c80, %c0_11] : memref<464x128xbf16, #tpu.memory_space<vmem>>, vector<128x128xbf16>
    %24 = arith.truncf %22 : vector<8x128xf32> to vector<8x128xbf16>
    %cst_12 = arith.constant dense<0.000000e+00> : vector<8x128xf32>
    %25 = tpu.matmul %24, %23, %cst_12 {dimension_numbers = #tpu.dot_dimension_numbers<[1], [0], [0], [1], [0, 0, 1, 1], [], []>} : vector<8x128xbf16>, vector<128x128xbf16>, vector<8x128xf32> -> vector<8x128xf32>
    %26 = vector.broadcast %9 : vector<1x128xf32> to vector<8x128xf32>
    %27 = arith.addf %25, %26 : vector<8x128xf32>
    %cst_13 = arith.constant 0.000000e+00 : f32
    %28 = vector.broadcast %cst_13 : f32 to vector<8x128xf32>
    %29 = arith.maximumf %27, %28 : vector<8x128xf32>
    %c208 = arith.constant 208 : index
    %c0_14 = arith.constant 0 : index
    %30 = vector.load %arg4[%c208, %c0_14] : memref<464x128xbf16, #tpu.memory_space<vmem>>, vector<128x128xbf16>
    %31 = arith.truncf %29 : vector<8x128xf32> to vector<8x128xbf16>
    %cst_15 = arith.constant dense<0.000000e+00> : vector<8x128xf32>
    %32 = tpu.matmul %31, %30, %cst_15 {dimension_numbers = #tpu.dot_dimension_numbers<[1], [0], [0], [1], [0, 0, 1, 1], [], []>} : vector<8x128xbf16>, vector<128x128xbf16>, vector<8x128xf32> -> vector<8x128xf32>
    %33 = vector.broadcast %10 : vector<1x128xf32> to vector<8x128xf32>
    %34 = arith.addf %32, %33 : vector<8x128xf32>
    %cst_16 = arith.constant 0.000000e+00 : f32
    %35 = vector.broadcast %cst_16 : f32 to vector<8x128xf32>
    %36 = arith.maximumf %34, %35 : vector<8x128xf32>
    %c336 = arith.constant 336 : index
    %c0_17 = arith.constant 0 : index
    %37 = vector.load %arg4[%c336, %c0_17] : memref<464x128xbf16, #tpu.memory_space<vmem>>, vector<128x128xbf16>
    %38 = arith.truncf %36 : vector<8x128xf32> to vector<8x128xbf16>
    %cst_18 = arith.constant dense<0.000000e+00> : vector<8x128xf32>
    %39 = tpu.matmul %38, %37, %cst_18 {dimension_numbers = #tpu.dot_dimension_numbers<[1], [0], [0], [1], [0, 0, 1, 1], [], []>} : vector<8x128xbf16>, vector<128x128xbf16>, vector<8x128xf32> -> vector<8x128xf32>
    %40 = vector.broadcast %11 : vector<1x128xf32> to vector<8x128xf32>
    %41 = arith.addf %39, %40 : vector<8x128xf32>
    %42 = vector.extract_strided_slice %41 {offsets = [0, 0], sizes = [8, 1], strides = [1, 1]} : vector<8x128xf32> to vector<8x1xf32>
    %43 = vector.extract_strided_slice %41 {offsets = [0, 1], sizes = [8, 1], strides = [1, 1]} : vector<8x128xf32> to vector<8x1xf32>
    %44 = vector.extract_strided_slice %41 {offsets = [0, 2], sizes = [8, 1], strides = [1, 1]} : vector<8x128xf32> to vector<8x1xf32>
    %45 = arith.subf %43, %42 : vector<8x1xf32>
    %46 = math.exp %45 : vector<8x1xf32>
    %cst_19 = arith.constant 1.000000e+00 : f32
    %47 = vector.broadcast %cst_19 : f32 to vector<8x1xf32>
    %48 = arith.addf %47, %46 : vector<8x1xf32>
    %49 = tpu.reciprocal %48 {approx = true} : vector<8x1xf32> -> vector<8x1xf32>
    %cst_20 = arith.constant 1.000000e+00 : f32
    %50 = vector.broadcast %cst_20 : f32 to vector<8x1xf32>
    %51 = arith.subf %50, %49 : vector<8x1xf32>
    %52 = tpu.iota {dimensions = array<i32: 1>} : vector<8x8xi32>
    %c0_i32 = arith.constant 0 : i32
    %53 = vector.broadcast %c0_i32 : i32 to vector<8x8xi32>
    %54 = arith.cmpi eq, %52, %53 : vector<8x8xi32>
    %c1_i32 = arith.constant 1 : i32
    %55 = vector.broadcast %c1_i32 : i32 to vector<8x8xi32>
    %56 = arith.cmpi eq, %52, %55 : vector<8x8xi32>
    %c2_i32 = arith.constant 2 : i32
    %57 = vector.broadcast %c2_i32 : i32 to vector<8x8xi32>
    %58 = arith.cmpi eq, %52, %57 : vector<8x8xi32>
    %cst_21 = arith.constant 0.000000e+00 : f32
    %59 = vector.shape_cast %44 : vector<8x1xf32> to vector<8x1xf32>
    %60 = vector.broadcast %59 : vector<8x1xf32> to vector<8x8xf32>
    %61 = vector.broadcast %cst_21 : f32 to vector<8x8xf32>
    %62 = arith.select %58, %60, %61 : vector<8x8xi1>, vector<8x8xf32>
    %63 = vector.shape_cast %51 : vector<8x1xf32> to vector<8x1xf32>
    %64 = vector.broadcast %63 : vector<8x1xf32> to vector<8x8xf32>
    %65 = arith.select %56, %64, %62 : vector<8x8xi1>, vector<8x8xf32>
    %66 = vector.shape_cast %49 : vector<8x1xf32> to vector<8x1xf32>
    %67 = vector.broadcast %66 : vector<8x1xf32> to vector<8x8xf32>
    %68 = arith.select %54, %67, %65 : vector<8x8xi1>, vector<8x8xf32>
    %c0_22 = arith.constant 0 : index
    %c0_23 = arith.constant 0 : index
    %69 = vector.load %arg5[%c0_22, %c0_23] : memref<8x8xf32, #tpu.memory_space<vmem>>, vector<8x8xf32>
    tpu.vector_store %arg5[%c0_22, %c0_23], %68 {strides = array<i32>} : memref<8x8xf32, #tpu.memory_space<vmem>>, vector<8x8xf32>,
    return
  }
  func.func @transform_0(%arg0: i32) -> (i32, i32) {
    %c0_i32 = arith.constant 0 : i32
    %c0_i32_0 = arith.constant 0 : i32
    return %arg0, %c0_i32 : i32, i32
  }
  func.func @transform_1(%arg0: i32) -> (i32, i32) {
    %c0_i32 = arith.constant 0 : i32
    %c0_i32_0 = arith.constant 0 : i32
    return %arg0, %c0_i32 : i32, i32
  }
  func.func @transform_2(%arg0: i32) -> (i32, i32) {
    %c0_i32 = arith.constant 0 : i32
    %c0_i32_0 = arith.constant 0 : i32
    return %arg0, %c0_i32 : i32, i32
  }
  func.func @transform_3(%arg0: i32) -> (i32, i32) {
    %c0_i32 = arith.constant 0 : i32
    %c0_i32_0 = arith.constant 0 : i32
    %c0_i32_1 = arith.constant 0 : i32
    return %c0_i32, %c0_i32_0 : i32, i32
  }
  func.func @transform_4(%arg0: i32) -> (i32, i32) {
    %c0_i32 = arith.constant 0 : i32
    %c0_i32_0 = arith.constant 0 : i32
    return %arg0, %c0_i32 : i32, i32
  }
}

</mosaic_0001>

<bundles_post_ra>
// kernel: tpu_custom_call.1
= control target key start
LH: loop header
LB: loop body
LE: loop exit
PB: predicated region body
PF: predicated region fallthrough
CT: control target
= control target key end

     0   :  { %9 = vsyncpa [#allocation3], 0  ;;  %s909_s0 = inlined_call_operand.vmem [shape: bf16[8,32], index: 0, kind: input, shape index: {}]   ;;  %s910_s1 = inlined_call_operand.vmem [shape: bf16[8,32], index: 1, kind: input, shape index: {}]   ;;  %s911_s2 = inlined_call_operand.vmem [shape: f32[8,1], index: 2, kind: input, shape index: {}]   ;;  %s912_s3 = inlined_call_operand.hbm [shape: bf16[464,128], index: 3, kind: input, shape index: {}]   ;;  %s913_s4 = inlined_call_operand.hbm [shape: f32[8,8], index: 4, kind: output, shape index: {}]  }
   0x1   :  { %10 = vsyncpa [#allocation4], 0  ;;  %s785_s15 = smov [#allocation2]   ;;  %s737_s19 = scalar_lea.hbm %s912_s3, 3712 }
   0x2   :  { %s22_s16 = sshll.u32 %s785_s15, 4  ;;  %p738_p0 = scmp.ne.s32.totalorder %s912_s3, %s737_s19  ;;  %s23_s16 = int_to_ptr.vmem [resolvable:$true] %s22_s16 }
   0x3   :  { %p741_p1 = scmp.lt.u32.totalorder %s737_s19, %s912_s3 }
   0x5   :  { %p743_p2 = pnand %p741_p1, %p738_p0 }
   0x7   :  { %746 = shalt.err (!%p743_p2)
}
   0x8   :  { %s747_s24 = scalar_lea.vmem %s23_s16, 3712  ;;  %p752_p4 = scmp.lt.s32.totalorder %s23_s16, %s23_s16 }
   0x9   :  { %p748_p3 = scmp.ne.s32.totalorder %s23_s16, %s747_s24  ;;  %p753_p5 = scmp.lt.s32.totalorder %s747_s24, %s747_s24 }
   0xb   :  { %p754_p6 = por %p753_p5, %p752_p4 }
   0xd   :  { %p755_p7 = pnand %p754_p6, %p748_p3 }
   0xf   :  { %758 = shalt.err (!%p755_p7)
}
  0x10   :  { %s786_s25 = smov 64   ;;  %s787_s26 = smov 4  }
  0x11   :  { %28 = dma.hbm_to_vmem [thread:$0]  %s912_s3, 3712, %s23_s16, [#allocation3], %s786_s25, %s786_s25, %s787_s26  }
  0x12   :  { %781 = dma.done.wait [#allocation3], 3712  }
  0x13   :  { %782 = vsyncadd [#allocation3], 4294963584  ;;  %v788_v0 = vmov 0.0   ;;  %vm789_vm0 = vmmov 0   ;;  %v790_v1 = vmov 0   ;;  %v705_v2 = vld [vmem:[#allocation2 + $0x10] sm:$0xff]   ;;  %v162_v23 = vlaneseq }
  0x14   :  { %615 = vmatprep.subr.bf16.mxu1 %v788_v0  ;;  %619 = vmatprep.mubr.msk.bf16.mxu1 %vm789_vm0, %v788_v0  ;;  %v706_v3 = vld [vmem:[#allocation2 + $0x18] sm:$0xff]   ;;  %v34_v4 = vld [vmem:[%s910_s1] sm:$0xf]  ;;  %v709_v6 = vld [vmem:[#allocation2 + $0x28] sm:$0xff]   ;;  %vm58_vm1 = vcmask 261120   ;;  %s794_s6 = smov [#allocation5]  }
  0x15   :  { %701 = vset.pattern.permute.xlu0 %v790_v1  ;;  %631 = vmatprep.subr.bf16.mxu0 %v788_v0  ;;  %v35_v5 = vld [vmem:[%s911_s2] sm:$0xff]  ;;  %v710_v8 = vld [vmem:[#allocation2 + $0x30] sm:$0xff]   ;;  %v708_v9 = vld [vmem:[#allocation2 + $0x8] sm:$0xff]   ;;  %v872_v24 = vshrl.u32 %v162_v23, 7  ;;  %s543_s7 = sshll.u32 %s794_s6, 4  ;;  %vm535_vm5 = vcmask 64512   ;;  %s544_s7 = int_to_ptr.vmem [resolvable:$true] %s543_s7 }
  0x16   :  { %647 = vmatprep.mubr.msk.bf16.mxu0 %vm789_vm0, %v788_v0  ;;  %616 = vmatpush3.bf16.msra.mxu1 %v705_v2  ;;  %v707_v7 = vld [vmem:[#allocation2] sm:$0xff]   ;;  %v711_v10 = vld [vmem:[#allocation2 + $0x38] sm:$0xff]   ;;  %v713_v13 = vld [vmem:[#allocation2 + $0x48] sm:$0xff]   ;;  %s759_s8 = scalar_lea.vmem %s544_s7, 128  ;;  %p764_p9 = scmp.lt.s32.totalorder %s544_s7, %s544_s7 }
  0x17   :  { %617 = vmatprep.subr.bf16.mxu1 %v788_v0  ;;  %159 = vperm.xlu0 %701, %v35_v5   ;;  %v33_v11 = vld [vmem:[%s909_s0] sm:$0xf]  ;;  %v714_v14 = vld [vmem:[#allocation2 + $0x50] sm:$0xff]   ;;  %v715_v15 = vld [vmem:[#allocation2 + $0x58] sm:$0xff]   ;;  %v164_v27 = vsub.s32 0, %v872_v24  ;;  %v170_v34 = vsub.s32 1, %v872_v24  ;;  %p760_p8 = scmp.ne.s32.totalorder %s544_s7, %s759_s8  ;;  %p765_p10 = scmp.lt.s32.totalorder %s759_s8, %s759_s8 }
  0x18   :  { %632 = vmatpush3.bf16.msra.mxu0 %v709_v6  ;;  %v712_v12 = vld [vmem:[#allocation2 + $0x40] sm:$0xff]   ;;  %v717_v17 = vld [vmem:[#allocation2 + $0x68] sm:$0xff]   ;;  %v718_v18 = vld [vmem:[#allocation2 + $0x70] sm:$0xff]   ;;  %v193_v54 = vsub.s32 2, %v872_v24  ;;  %v303_v2 = vsub.s32 3, %v872_v24  ;;  %s792_s0 = smov 1  }
  0x19   :  { %633 = vmatprep.subr.bf16.mxu0 %v788_v0  ;;  %v716_v16 = vld [vmem:[#allocation2 + $0x60] sm:$0xff]   ;;  %v719_v19 = vld [vmem:[#allocation2 + $0x78] sm:$0xff]   ;;  %v721_v21 = vld [vmem:[#allocation2 + $0x88] sm:$0xff]   ;;  %p766_p11 = por %p765_p10, %p764_p9 }
  0x1a   :  { %618 = vmatpush3.bf16.msra.mxu1 %v706_v3  ;;  %v720_v20 = vld [vmem:[#allocation2 + $0x80] sm:$0xff]   ;;  %v722_v22 = vld [vmem:[#allocation2 + $0x90] sm:$0xff]   ;;  %v723_v46 = vld [vmem:[#allocation2 + $0x98] sm:$0xff]  }
  0x1b   :  { %623 = vmatprep.subr.bf16.mxu1 %v788_v0  ;;  %v44_v25 = vld [vmem:[#allocation2 + $0x20] sm:$0xf]  ;;  %v725_v48 = vld [vmem:[#allocation2 + $0xa8] sm:$0xff]   ;;  %v726_v49 = vld [vmem:[#allocation2 + $0xb0] sm:$0xff]   ;;  %p767_p12 = pnand %p766_p11, %p760_p8 }
  0x1c   :  { %634 = vmatpush3.bf16.msra.mxu0 %v710_v8  ;;  %v874_v26 = vunpack.c.l.bf16 %v44_v25  ;;  %v724_v47 = vld [vmem:[#allocation2 + $0xa0] sm:$0xff]   ;;  %v727_v50 = vld [vmem:[#allocation2 + $0xb8] sm:$0xff]   ;;  %v729_v52 = vld [vmem:[#allocation2 + $0xc8] sm:$0xff]  }
  0x1d   :  { %620 = vmatmul.mubr.msk.bf16.vlgmr.msra.gmra.mrb[0].mxu1 %vm58_vm1, %v34_v4  ;;  %635 = vmatprep.subr.bf16.mxu0 %v788_v0  ;;  %v728_v51 = vld [vmem:[#allocation2 + $0xc0] sm:$0xff]   ;;  %v730_v53 = vld [vmem:[#allocation2 + $0xd0] sm:$0xff]   ;;  %v731_v63 = vld [vmem:[#allocation2 + $0xd8] sm:$0xff]  }
  0x1e   :  { %624 = vmatpush3.bf16.msra.mxu1 %v707_v7  ;;  %627 = vmatprep.mubr.msk.bf16.mxu1 %vm789_vm0, %v788_v0  ;;  %v165_v32 = vrot.slane %v874_v26, %v164_v27  ;;  %v171_v38 = vrot.slane %v874_v26, %v170_v34  ;;  %v194_v55 = vrot.slane %v874_v26, %v193_v54  ;;  %v732_v1 = vld [vmem:[#allocation2 + $0xe0] sm:$0xff]   ;;  %v514_v27 = vand.u32 127, %v162_v23 }
  0x1f   :  { %625 = vmatprep.subr.bf16.mxu1 %v788_v0  ;;  %v304_v3 = vrot.slane %v874_v26, %v303_v2 }
  0x20   :  { %636 = vmatpush3.bf16.msra.mxu0 %v711_v10  ;;  %vm517_vm2 = vcmp.eq.s32.totalorder %v514_v27, 2  ;;  %vm516_vm3 = vcmp.eq.s32.totalorder %v514_v27, 1  ;;  %vm515_vm4 = vcmp.eq.s32.totalorder %v514_v27, 0 }
  0x21   :  { %637 = vmatprep.subr.bf16.mxu0 %v788_v0 }
  0x22   :  { %626 = vmatpush3.bf16.msra.mxu1 %v708_v9 }
  0x23   :  { %651 = vmatprep.subr.bf16.mxu1 %v788_v0 }
  0x24   :  { %638 = vmatpush3.bf16.msra.mxu0 %v712_v12  ;;  %v413_v12 = vsub.s32 4, %v872_v24 }
  0x25   :  { %628 = vmatmul.mubr.msk.bf16.vlgmr.msra.gmra.mrb[4].mxu1 %vm58_vm1, %v33_v11  ;;  %639 = vmatprep.subr.bf16.mxu0 %v788_v0  ;;  %v791_v11 = vmov 2  }
  0x26   :  { %667 = vmatprep.mubr.msk.bf16.mxu1 %vm789_vm0, %v788_v0  ;;  %652 = vmatpush3.bf16.msra.mxu1 %v717_v17 }
  0x27   :  { %653 = vmatprep.subr.bf16.mxu1 %v788_v0  ;;  %702 = vset.pattern.permute.xlu1 %v791_v11 }
  0x28   :  { %640 = vmatpush3.bf16.msra.mxu0 %v713_v13 }
  0x29   :  { %641 = vmatprep.subr.bf16.mxu0 %v788_v0 }
  0x2a   :  { %654 = vmatpush3.bf16.msra.mxu1 %v718_v18  ;;  %v793_v18 = vmov 1  }
  0x2b   :  { %655 = vmatprep.subr.bf16.mxu1 %v788_v0  ;;  %704 = vset.pattern.permute.xlu0 %v793_v18 }
  0x2c   :  { %642 = vmatpush3.bf16.msra.mxu0 %v714_v14 }
  0x2d   :  { %643 = vmatprep.subr.bf16.mxu0 %v788_v0 }
  0x2e   :  { %656 = vmatpush3.bf16.msra.mxu1 %v719_v19 }
  0x2f   :  { %657 = vmatprep.subr.bf16.mxu1 %v788_v0 }
  0x30   :  { %644 = vmatpush3.bf16.msra.mxu0 %v715_v15 }
  0x31   :  { %645 = vmatprep.subr.bf16.mxu0 %v788_v0 }
  0x32   :  { %658 = vmatpush3.bf16.msra.mxu1 %v720_v20 }
  0x33   :  { %659 = vmatprep.subr.bf16.mxu1 %v788_v0 }
  0x34   :  { %646 = vmatpush3.bf16.msra.mxu0 %v716_v16 }
  0x35   :  { %671 = vmatprep.subr.bf16.mxu0 %v788_v0 }
  0x36   :  { %660 = vmatpush3.bf16.msra.mxu1 %v721_v21 }
  0x37   :  { %661 = vmatprep.subr.bf16.mxu1 %v788_v0 }
  0x3a   :  { %662 = vmatpush3.bf16.msra.mxu1 %v722_v22 }
  0x3b   :  { %663 = vmatprep.subr.bf16.mxu1 %v788_v0 }
  0x3e   :  { %664 = vmatpush3.bf16.msra.mxu1 %v723_v46 }
  0x3f   :  { %665 = vmatprep.subr.bf16.mxu1 %v788_v0 }
  0x42   :  { %666 = vmatpush3.bf16.msra.mxu1 %v724_v47 }
  0x96   :  { %v160_v33 = vpop.permute.xlu0 %159 }
  0x97   :  { %v166_v35 = vmul.f32 %v165_v32, %v160_v33 }
  0xf0   :  { %v96_v28 = vpop.f32.mrb[0].mxu1 }
  0xf1   :  { %v621_v29 = vpop.f32.mrb[1].mxu1 }
  0xf2   :  { %v99_v30 = vpop.f32.mrb[2].mxu1 }
  0xf3   :  { %v622_v31 = vpop.f32.mrb[3].mxu1 }
  0xf8   :  { %v151_v36 = vpop.f32.mrb[4].mxu1 }
  0xf9   :  { %v152_v37 = vadd.f32 %v151_v36, %v96_v28  ;;  %v629_v39 = vpop.f32.mrb[5].mxu1 }
  0xfa   :  { %v154_v40 = vpop.f32.mrb[6].mxu1 }
  0xfb   :  { %v167_v41 = vadd.f32 %v166_v35, %v152_v37  ;;  %v630_v42 = vpop.f32.mrb[7].mxu1 }
  0xfd   :  { %v172_v43 = vadd.f32 %v171_v38, %v167_v41 }
  0xff   :  { %v173_v44 = vmax.f32 %v172_v43, 0.0 }
 0x101   :  { %v190_v45 = vpack.c.bf16 %v173_v44, %v173_v44 }
 0x103   :  { %648 = vmatmul.mubr.bf16.vlgmr.msra.gmra.mrb[0].mxu0 %v190_v45 }
 0x104   :  { %687 = vmatprep.mubr.msk.bf16.mxu0 %vm789_vm0, %v788_v0  ;;  %672 = vmatpush3.bf16.msra.mxu0 %v725_v48 }
 0x105   :  { %673 = vmatprep.subr.bf16.mxu0 %v788_v0 }
 0x108   :  { %674 = vmatpush3.bf16.msra.mxu0 %v726_v49 }
 0x109   :  { %675 = vmatprep.subr.bf16.mxu0 %v788_v0 }
 0x10c   :  { %676 = vmatpush3.bf16.msra.mxu0 %v727_v50 }
 0x10d   :  { %677 = vmatprep.subr.bf16.mxu0 %v788_v0 }
 0x110   :  { %678 = vmatpush3.bf16.msra.mxu0 %v728_v51 }
 0x111   :  { %679 = vmatprep.subr.bf16.mxu0 %v788_v0 }
 0x114   :  { %680 = vmatpush3.bf16.msra.mxu0 %v729_v52 }
 0x115   :  { %681 = vmatprep.subr.bf16.mxu0 %v788_v0 }
 0x118   :  { %682 = vmatpush3.bf16.msra.mxu0 %v730_v53 }
 0x119   :  { %683 = vmatprep.subr.bf16.mxu0 %v788_v0 }
 0x11c   :  { %684 = vmatpush3.bf16.msra.mxu0 %v731_v63 }
 0x11d   :  { %685 = vmatprep.subr.bf16.mxu0 %v788_v0  ;;  %v414_v0 = vrot.slane %v874_v26, %v413_v12 }
 0x120   :  { %686 = vmatpush3.bf16.msra.mxu0 %v732_v1 }
 0x1d6   :  { %v277_v56 = vpop.f32.mrb[0].mxu0 }
 0x1d7   :  { %v278_v57 = vadd.f32 %v277_v56, %v194_v55  ;;  %v649_v58 = vpop.f32.mrb[1].mxu0 }
 0x1d8   :  { %v280_v59 = vpop.f32.mrb[2].mxu0 }
 0x1d9   :  { %v283_v60 = vmax.f32 %v278_v57, 0.0  ;;  %v650_v61 = vpop.f32.mrb[3].mxu0 }
 0x1db   :  { %v300_v62 = vpack.c.bf16 %v283_v60, %v283_v60 }
 0x1dd   :  { %668 = vmatmul.mubr.bf16.vlgmr.msra.gmra.mrb[8].mxu1 %v300_v62 }
 0x2b0   :  { %v387_v4 = vpop.f32.mrb[8].mxu1 }
 0x2b1   :  { %v388_v5 = vadd.f32 %v387_v4, %v304_v3  ;;  %v669_v6 = vpop.f32.mrb[9].mxu1 }
 0x2b2   :  { %v390_v7 = vpop.f32.mrb[10].mxu1 }
 0x2b3   :  { %v393_v8 = vmax.f32 %v388_v5, 0.0  ;;  %v670_v9 = vpop.f32.mrb[11].mxu1 }
 0x2b5   :  { %v410_v10 = vpack.c.bf16 %v393_v8, %v393_v8 }
 0x2b7   :  { %688 = vmatmul.mubr.bf16.vlgmr.msra.gmra.mrb[4].mxu0 %v410_v10 }
 0x38a   :  { %v497_v13 = vpop.f32.mrb[4].mxu0 }
 0x38b   :  { %v498_v14 = vadd.f32 %v497_v13, %v414_v0  ;;  %v689_v15 = vpop.f32.mrb[5].mxu0 }
 0x38c   :  { %v500_v16 = vpop.f32.mrb[6].mxu0 }
 0x38d   :  { %519 = vperm.xlu1 %702, %v498_v14   ;;  %504 = vrot.lane.b32.xlu0 %v498_v14, %s792_s0  ;;  %v690_v17 = vpop.f32.mrb[7].mxu0 }
 0x391   :  { %703 = vset.pattern.permute.xlu1 %v793_v18 }
 0x3ff   :  { %v505_v19 = vpop.permute.xlu0 %504 }
 0x400   :  { %v507_v20 = vsub.f32 %v498_v14, %v505_v19 }
 0x402   :  { %v508_v21 = vmul.f32 1.442695, %v507_v20 }
 0x404   :  { %733 = vpow2.f32 %v508_v21 }
 0x40c   :  { %v520_v28 = vpop.permute.xlu1 %519 }
 0x40d   :  { %v522_v29 = vsel %vm517_vm2, %v520_v28, 0.0 }
 0x40e   :  { %v734_v22 = vpop.eup %733 }
 0x40f   :  { %v510_v25 = vadd.f32 1.0, %v734_v22 }
 0x411   :  { %735 = vrcp.f32 %v510_v25 }
 0x41b   :  { %v736_v24 = vpop.eup %735 }
 0x41c   :  { %531 = vperm.xlu0 %704, %v736_v24   ;;  %v512_v26 = vsub.f32 1.0, %v736_v24 }
 0x41e   :  { %525 = vperm.xlu1 %703, %v512_v26  }
 0x49b   :  { %v532_v31 = vpop.permute.xlu0 %531 }
 0x49d   :  { %v526_v30 = vpop.permute.xlu1 %525 }
 0x49e   :  { %v528_v32 = vsel %vm516_vm3, %v526_v30, %v522_v29 }
 0x49f   :  { %v534_v33 = vsel %vm515_vm4, %v532_v31, %v528_v32 }
 0x4a0   :  { %536 = vst.msk [vmem:[#allocation5] sm:$0xff] %vm535_vm5, %v534_v33 }
 0x4a1   :  { %770 = shalt.err (!%p767_p12)
}
 0x4a2   :  { %s771_s11 = scalar_lea.hbm %s913_s4, 128 }
 0x4a3   :  { %p772_p13 = scmp.ne.s32.totalorder %s913_s4, %s771_s11  ;;  %p775_p0 = scmp.lt.u32.totalorder %s771_s11, %s913_s4 }
 0x4a5   :  { %p777_p1 = pnand %p775_p0, %p772_p13 }
 0x4a7   :  { %780 = shalt.err (!%p777_p1)
}
 0x4a8   :  { %546 = dma.vmem_to_hbm [thread:$0]  %s544_s7, 128, %s913_s4, [#allocation4]  }
 0x4a9   :  { %783 = dma.done.wait [#allocation4], 128  }
 0x4aa   :  { %784 = vsyncadd [#allocation4], 4294967168 }
 0x4ab   :  { %550 = vsyncpa [#allocation3], 1 }
 0x4ac   :  { %551 = vsyncpa [#allocation4], 1 }

</bundles_post_ra>
